<compile_context>
chip_gen: v5e
topology: v5e:2x2
jax: 0.10.0
libtpu: 0.0.40
codegen_flags: <defaults>
</compile_context>

<pallas_src>
import functools

import jax
import jax.numpy as jnp
from jax.experimental import pallas as pl
from jax.experimental.pallas import tpu as pltpu


def _qann_kernel(x_ref, w1_ref, b1_ref, w234_ref, b234_ref, o_ref):
    # x_ref:    (window, TN)  window on sublanes, tokens (= batch*zone) on lanes
    # w1_ref:   (FC, window)  linear1.weight (PyTorch orientation), f32 or bf16
    # b1_ref:   (FC, 1)       f32
    # w234_ref: (2, FC)       fused linear2/linear3/final-linear weight, f32 or bf16
    # b234_ref: (2, 1)        f32
    # o_ref:    (2, TN)       f32, lane-dense stores
    #
    # MXU matmul #1: (FC, window) @ (window, TN) -> (FC, TN), f32 accumulation.
    h1 = jnp.dot(w1_ref[...], x_ref[...], preferred_element_type=jnp.float32)
    # Bias + ReLU in f32 (v5e VPU has no bf16 elementwise support).
    h1 = jnp.maximum(h1 + b1_ref[...], 0.0)
    # MXU matmul #2 (fused linear2/3/final): (2, FC) @ (FC, TN) -> (2, TN).
    out = jnp.dot(w234_ref[...], h1.astype(w234_ref.dtype),
                  preferred_element_type=jnp.float32)
    o_ref[...] = jnp.tanh(out + b234_ref[...]).astype(o_ref.dtype)


@functools.partial(
    jax.jit, static_argnames=("window", "n_zone", "fc_unit", "tn", "use_bf16"))
def qann_forward(x, fused_params, *, window, n_zone, fc_unit, tn=None, use_bf16=False):
    """x: (B, window, n_zone) float32 (the layout the PyTorch module views into)."""
    B = x.shape[0]
    assert x.shape == (B, window, n_zone), x.shape
    w1, b1, w234, b234 = fused_params

    # Token axis: one column per (batch, zone) pair, mapped to lanes.
    T = B * n_zone
    if tn is None:
        t128 = pl.cdiv(T, 128) * 128
        # One step when the whole token axis fits in a modest tile; otherwise 2048-lane
        # tiles (~192 KiB of f32 x per step) -> near HBM roofline, and >=2 balanced
        # "parallel" steps for v7x's two TensorCores once the problem is big enough.
        tn = min(t128, 2048)
    n_steps = pl.cdiv(T, tn)
    T_pad = n_steps * tn

    # (B, window, n_zone) -> (window, B*n_zone): tokens become the fast lane axis.
    x_wt = jnp.transpose(x, (1, 0, 2)).reshape(window, T)
    if T_pad != T:
        x_wt = jnp.pad(x_wt, ((0, 0), (0, T_pad - T)))

    # Optional bf16 MXU operands (halves the HBM stream of x); accumulation and all
    # elementwise math stay f32. Fused weights were computed in f32 and cast here.
    mm_dtype = jnp.bfloat16 if use_bf16 else jnp.float32
    x_wt = x_wt.astype(mm_dtype)
    w1_mm = w1.astype(mm_dtype)
    w234_mm = w234.astype(mm_dtype)
    b1 = b1.astype(jnp.float32)
    b234 = b234.astype(jnp.float32)

    def const_spec(shape):
        # Constant parameters: no double-buffering / per-step DMA descriptors.
        return pl.BlockSpec(shape, lambda i: (0, 0), pipeline_mode=pl.Buffered(1))

    out2t = pl.pallas_call(
        _qann_kernel,
        out_shape=jax.ShapeDtypeStruct((2, T_pad), jnp.float32),
        grid_spec=pltpu.PrefetchScalarGridSpec(
            num_scalar_prefetch=0,
            grid=(n_steps,),
            in_specs=[
                pl.BlockSpec((window, tn), lambda i: (0, i)),   # x token tile
                const_spec(w1_mm.shape),
                const_spec(b1.shape),
                const_spec(w234_mm.shape),
                const_spec(b234.shape),
            ],
            out_specs=pl.BlockSpec((2, tn), lambda i: (0, i)),
        ),
        compiler_params=pltpu.CompilerParams(
            dimension_semantics=("parallel",)),
    )(x_wt, w1_mm, b1, w234_mm, b234)

    # Drop padded tokens (they hold tanh(b234) garbage), then reshape to (B, n_zone, 2).
    out = out2t[:, :T]
    return jnp.transpose(out.reshape(2, B, n_zone), (1, 2, 0))


def init_params(key, window, fc_unit):
    """Deterministic init mimicking torch.nn.Linear (uniform +/- 1/sqrt(fan_in)).

    Weights are stored in PyTorch orientation (out_features, in_features),
    biases as (out_features,).
    """
    def linear(k, fan_in, fan_out):
        kw, kb = jax.random.split(k)
        bound = 1.0 / jnp.sqrt(fan_in)
        w = jax.random.uniform(kw, (fan_out, fan_in), jnp.float32, -bound, bound)
        b = jax.random.uniform(kb, (fan_out,), jnp.float32, -bound, bound)
        return w, b

    k1, k2, k3, k4 = jax.random.split(key, 4)
    w1, b1 = linear(k1, window, fc_unit)            # linear1: window -> FC
    w2, b2 = linear(k2, fc_unit, 2 * fc_unit)       # linear2: FC -> 2*FC
    w3, b3 = linear(k3, 2 * fc_unit, fc_unit)       # linear3: 2*FC -> FC
    w4, b4 = linear(k4, fc_unit, 2)                 # final linear: FC -> 2
    return (w1, b1, w2, b2, w3, b3, w4, b4)


def fuse_params(params):
    """Fold linear2/linear3/final-linear (no nonlinearity between them) into one affine map.

    Computed in f32; cast to bf16 (if requested) only at the pallas_call boundary.
    """
    w1, b1, w2, b2, w3, b3, w4, b4 = params
    w234 = w4 @ w3 @ w2                      # (2, FC)
    b234 = w4 @ (w3 @ b2 + b3) + b4          # (2,)
    return (w1, b1.reshape(-1, 1), w234, b234.reshape(-1, 1))


def reference_forward(x, params, *, window, n_zone):
    """Pure-JAX reference of the original (unfused) layer chain for correctness checking."""
    w1, b1, w2, b2, w3, b3, w4, b4 = params
    B = x.shape[0]
    xr = jnp.transpose(x.reshape(B, window, n_zone), (0, 2, 1))   # (B, n_zone, window)
    h1 = jnp.maximum(xr @ w1.T + b1, 0.0)
    h2 = h1 @ w2.T + b2
    h3 = h2 @ w3.T + b3
    return jnp.tanh(h3 @ w4.T + b4)


if __name__ == "__main__":
    # Small shapes consistent with the module defaults.
    batch, window, n_zone, fc_unit = 2, 24, 20, 16

    key = jax.random.PRNGKey(0)
    kx, kp = jax.random.split(key)
    x = jax.random.normal(kx, (batch, window, n_zone), jnp.float32)
    params = init_params(kp, window, fc_unit)
    fused = fuse_params(params)
    ref = reference_forward(x, params, window=window, n_zone=n_zone)

    # f32 path (single grid step), tight tolerance vs the unfused reference.
    out = qann_forward(x, fused, window=window, n_zone=n_zone, fc_unit=fc_unit)
    out = jax.block_until_ready(out)
    assert out.shape == (batch, n_zone, 2), out.shape
    assert jnp.allclose(out, ref, atol=2e-5, rtol=2e-5), float(jnp.max(jnp.abs(out - ref)))

    # bf16 matmul-operand path (f32 accumulate + f32 elementwise): looser tolerance.
    out_bf = qann_forward(x, fused, window=window, n_zone=n_zone, fc_unit=fc_unit,
                          use_bf16=True)
    out_bf = jax.block_until_ready(out_bf)
    assert jnp.allclose(out_bf, ref, atol=5e-2), float(jnp.max(jnp.abs(out_bf - ref)))

    # Larger batch: exercises multi-step grid + lane padding (T = 4160 -> 3 steps of 2048).
    batch_big = 208
    x_big = jax.random.normal(jax.random.PRNGKey(1), (batch_big, window, n_zone),
                              jnp.float32)
    ref_big = reference_forward(x_big, params, window=window, n_zone=n_zone)
    out_big = qann_forward(x_big, fused, window=window, n_zone=n_zone, fc_unit=fc_unit)
    out_big = jax.block_until_ready(out_big)
    assert out_big.shape == (batch_big, n_zone, 2), out_big.shape
    assert jnp.allclose(out_big, ref_big, atol=2e-5, rtol=2e-5), \
        float(jnp.max(jnp.abs(out_big - ref_big)))

    print("KERNEL_OK")
</pallas_src>

<mosaic_0001>
module attributes {stable_mosaic.version = 11 : i64} {
  func.func @_qann_kernel(%arg0: i32, %arg1: memref<24x128xf32, #tpu.memory_space<vmem>>, %arg2: memref<16x24xf32, #tpu.memory_space<vmem>>, %arg3: memref<16x1xf32, #tpu.memory_space<vmem>>, %arg4: memref<2x16xf32, #tpu.memory_space<vmem>>, %arg5: memref<2x1xf32, #tpu.memory_space<vmem>>, %arg6: memref<2x128xf32, #tpu.memory_space<vmem>>) attributes {dimension_semantics = [#tpu.dimension_semantics<parallel>], iteration_bounds = array<i64: 1>, scalar_prefetch = 0 : i64, scratch_operands = 0 : i64, tpu.core_type = #tpu.core_type<tc>, window_params = [{transform_indices = @transform_0, window_bounds = array<i64: 24, 128>}, {pipeline_mode = #tpu.pipeline_mode<synchronous>, transform_indices = @transform_1, window_bounds = array<i64: 16, 24>}, {pipeline_mode = #tpu.pipeline_mode<synchronous>, transform_indices = @transform_2, window_bounds = array<i64: 16, 1>}, {pipeline_mode = #tpu.pipeline_mode<synchronous>, transform_indices = @transform_3, window_bounds = array<i64: 2, 16>}, {pipeline_mode = #tpu.pipeline_mode<synchronous>, transform_indices = @transform_4, window_bounds = array<i64: 2, 1>}, {transform_indices = @transform_5, window_bounds = array<i64: 2, 128>}]} {
    %c0 = arith.constant 0 : index
    %c0_0 = arith.constant 0 : index
    %0 = vector.load %arg2[%c0, %c0_0] : memref<16x24xf32, #tpu.memory_space<vmem>>, vector<16x24xf32>
    %c0_1 = arith.constant 0 : index
    %c0_2 = arith.constant 0 : index
    %1 = vector.load %arg1[%c0_1, %c0_2] : memref<24x128xf32, #tpu.memory_space<vmem>>, vector<24x128xf32>
    %cst = arith.constant dense<0.000000e+00> : vector<16x128xf32>
    %2 = tpu.matmul %0, %1, %cst {dimension_numbers = #tpu.dot_dimension_numbers<[1], [0], [0], [1], [0, 0, 1, 1], [], []>} : vector<16x24xf32>, vector<24x128xf32>, vector<16x128xf32> -> vector<16x128xf32>
    %c0_3 = arith.constant 0 : index
    %c0_4 = arith.constant 0 : index
    %3 = vector.load %arg3[%c0_3, %c0_4] : memref<16x1xf32, #tpu.memory_space<vmem>>, vector<16x1xf32>
    %4 = vector.broadcast %3 : vector<16x1xf32> to vector<16x128xf32>
    %5 = arith.addf %2, %4 : vector<16x128xf32>
    %cst_5 = arith.constant 0.000000e+00 : f32
    %6 = vector.broadcast %cst_5 : f32 to vector<16x128xf32>
    %7 = arith.maximumf %5, %6 : vector<16x128xf32>
    %c0_6 = arith.constant 0 : index
    %c0_7 = arith.constant 0 : index
    %8 = vector.load %arg4[%c0_6, %c0_7] : memref<2x16xf32, #tpu.memory_space<vmem>>, vector<2x16xf32>
    %cst_8 = arith.constant dense<0.000000e+00> : vector<2x128xf32>
    %9 = tpu.matmul %8, %7, %cst_8 {dimension_numbers = #tpu.dot_dimension_numbers<[1], [0], [0], [1], [0, 0, 1, 1], [], []>} : vector<2x16xf32>, vector<16x128xf32>, vector<2x128xf32> -> vector<2x128xf32>
    %c0_9 = arith.constant 0 : index
    %c0_10 = arith.constant 0 : index
    %10 = vector.load %arg5[%c0_9, %c0_10] : memref<2x1xf32, #tpu.memory_space<vmem>>, vector<2x1xf32>
    %11 = vector.broadcast %10 : vector<2x1xf32> to vector<2x128xf32>
    %12 = arith.addf %9, %11 : vector<2x128xf32>
    %13 = math.tanh %12 : vector<2x128xf32>
    %c0_11 = arith.constant 0 : index
    %c0_12 = arith.constant 0 : index
    %14 = vector.load %arg6[%c0_11, %c0_12] : memref<2x128xf32, #tpu.memory_space<vmem>>, vector<2x128xf32>
    tpu.vector_store %arg6[%c0_11, %c0_12], %13 {strides = array<i32>} : memref<2x128xf32, #tpu.memory_space<vmem>>, vector<2x128xf32>,
    return
  }
  func.func @transform_0(%arg0: i32) -> (i32, i32) {
    %c0_i32 = arith.constant 0 : i32
    %c0_i32_0 = arith.constant 0 : i32
    return %c0_i32, %arg0 : i32, i32
  }
  func.func @transform_1(%arg0: i32) -> (i32, i32) {
    %c0_i32 = arith.constant 0 : i32
    %c0_i32_0 = arith.constant 0 : i32
    %c0_i32_1 = arith.constant 0 : i32
    return %c0_i32, %c0_i32_0 : i32, i32
  }
  func.func @transform_2(%arg0: i32) -> (i32, i32) {
    %c0_i32 = arith.constant 0 : i32
    %c0_i32_0 = arith.constant 0 : i32
    %c0_i32_1 = arith.constant 0 : i32
    return %c0_i32, %c0_i32_0 : i32, i32
  }
  func.func @transform_3(%arg0: i32) -> (i32, i32) {
    %c0_i32 = arith.constant 0 : i32
    %c0_i32_0 = arith.constant 0 : i32
    %c0_i32_1 = arith.constant 0 : i32
    return %c0_i32, %c0_i32_0 : i32, i32
  }
  func.func @transform_4(%arg0: i32) -> (i32, i32) {
    %c0_i32 = arith.constant 0 : i32
    %c0_i32_0 = arith.constant 0 : i32
    %c0_i32_1 = arith.constant 0 : i32
    return %c0_i32, %c0_i32_0 : i32, i32
  }
  func.func @transform_5(%arg0: i32) -> (i32, i32) {
    %c0_i32 = arith.constant 0 : i32
    %c0_i32_0 = arith.constant 0 : i32
    return %c0_i32, %arg0 : i32, i32
  }
}

</mosaic_0001>

<bundles_post_ra>
// kernel: qann_forward.1
= control target key start
LH: loop header
LB: loop body
LE: loop exit
PB: predicated region body
PF: predicated region fallthrough
CT: control target
= control target key end

     0   :  { %v117_v2 = vmov 0   ;;  %vm37_vm0 = vcmask 195584   ;;  %vm76_vm1 = vcmask 130048   ;;  %s178_s0 = inlined_call_operand.vmem [shape: f32[24,128], index: 0, kind: input, shape index: {}]   ;;  %s179_s2 = inlined_call_operand.vmem [shape: f32[16,1], index: 2, kind: input, shape index: {}]   ;;  %s180_s1 = inlined_call_operand.vmem [shape: f32[16,24], index: 1, kind: input, shape index: {}]   ;;  %s181_s4 = inlined_call_operand.vmem [shape: f32[2,1], index: 4, kind: input, shape index: {}]   ;;  %s182_s3 = inlined_call_operand.vmem [shape: f32[2,16], index: 3, kind: input, shape index: {}]   ;;  %s183_s5 = inlined_call_operand.vmem [shape: f32[2,128], index: 5, kind: output, shape index: {}]  }
   0x1   :  { %v24_v0 = vld [vmem:[%s178_s0 + $0x10] sm:$0xff]  ;;  %v23_v1 = vld [vmem:[%s178_s0 + $0x8] sm:$0xff]  ;;  %113 = vset.pattern.permute.xlu0 %v117_v2  ;;  %114 = vset.pattern.permute.xlu1 %v117_v2  ;;  %v22_v4 = vld [vmem:[%s178_s0] sm:$0xff] }
   0x2   :  { %57 = vmatpush.msra.mxu0 %v24_v0  ;;  %109 = vmatpush.msra.mxu2 %v24_v0  ;;  %v26_v3 = vld [vmem:[%s179_s2 + $0x8] sm:$0xff]  ;;  %v20_v5 = vld [vmem:[%s180_s1] sm:$0xff] }
   0x3   :  { %34 = vperm.xlu0 %113, %v26_v3   ;;  %v21_v6 = vld [vmem:[%s180_s1 + $0x8] sm:$0xff]  ;;  %v25_v7 = vld [vmem:[%s179_s2] sm:$0xff] }
   0x4   :  { %58 = vmatpush.msra.mxu0 %v23_v1  ;;  %110 = vmatpush.msra.mxu2 %v23_v1  ;;  %v70_v8 = vld [vmem:[%s181_s4] sm:$0x3] }
   0x5   :  { %73 = vperm.xlu1 %114, %v70_v8   ;;  %v69_v17 = vld [vmem:[%s182_s3] sm:$0x3] }
   0x6   :  { %59 = vmatpush.msra.mxu0 %v22_v4  ;;  %111 = vmatpush.msra.mxu2 %v22_v4 }
   0x7   :  { %106 = vmatmul.msk.f32.vlgmr.msra.gmra.mxu0 %vm37_vm0, %v20_v5  ;;  %107 = vmatmul.msk.f32.vlgmr.msra.gmra.mxu2 %vm37_vm0, %v21_v6 }
   0xb   :  { %29 = vperm.xlu0 %113, %v25_v7  }
  0x75   :  { %v35_v9 = vpop.permute.xlu0 %34 }
  0x77   :  { %v74_v18 = vpop.permute.xlu1 %73 }
  0x7d   :  { %v30_v10 = vpop.permute.xlu0 %29 }
  0x84   :  { %v61_v11 = vpop.f32.mrf.mxu0 }
  0x85   :  { %v62_v13 = vadd.f32 %v61_v11, %v30_v10 }
  0x87   :  { %v67_v16 = vmax.f32 %v62_v13, 0.0 }
  0x8a   :  { %v64_v12 = vpop.f32.mrf.mxu2 }
  0x8b   :  { %v65_v14 = vadd.f32 %v64_v12, %v35_v9 }
  0x8d   :  { %v68_v15 = vmax.f32 %v65_v14, 0.0 }
  0x8f   :  { %94 = vmatpush.msra.mxu1 %v68_v15 }
  0x91   :  { %95 = vmatpush.msra.mxu1 %v67_v16 }
  0x92   :  { %108 = vmatmul.msk.f32.vlgmr.msra.gmra.mxu1 %vm76_vm1, %v69_v17 }
 0x10f   :  { %v97_v19 = vpop.f32.mrf.mxu1 }
 0x110   :  { %v98_v20 = vadd.f32 %v97_v19, %v74_v18 }
 0x112   :  { %115 = vtanh.f32 %v98_v20 }
 0x118   :  { %v116_v21 = vpop.eup %115 }
 0x119   :  { %101 = vst [vmem:[%s183_s5] sm:$0x3] %v116_v21 }

</bundles_post_ra>
